<compile_context>
chip_gen: v7x
topology: tpu7x:2x2x1
jax: 0.10.0
libtpu: 0.0.40
codegen_flags: <defaults>
</compile_context>

<pallas_src>
import math

import jax
import jax.numpy as jnp
from jax import lax
from jax.experimental import pallas as pl
from jax.experimental.pallas import tpu as pltpu  # noqa: F401  (TPU backend)

# ----------------------------- configuration ------------------------------
BATCH = 2
SEQ = 4
HEAD = 4
EMB = 32
DK = EMB // HEAD          # 8
SCALE = 1.0 / math.sqrt(DK)


# ------------------------------ fused kernel --------------------------------
def _make_mha_kernel(self_attention: bool):
    """Builds the fused MHA forward kernel (single invocation, no grid)."""

    def kernel(*refs):
        if self_attention:
            x_ref, w_ref, m_ref, out_ref, attn_ref = refs
        else:
            q_ref, k_ref, v_ref, w_ref, m_ref, out_ref, attn_ref = refs

        # Packed weight slab: rows [0:EMB] = [Wqkv | Wo], row EMB = [bqkv | bo].
        w = w_ref[...]                                     # (EMB+1, 4*EMB)
        w_qkv = w[:EMB, :3 * EMB]                          # (EMB, 3*EMB), Q pre-scaled
        w_o = w[:EMB, 3 * EMB:]                            # (EMB, EMB)
        b_qkv = w[EMB:EMB + 1, :3 * EMB]                   # (1, 3*EMB)
        b_o = w[EMB:EMB + 1, 3 * EMB:]                     # (1, EMB)

        if self_attention:
            # One wide MXU matmul: (m, EMB) @ (EMB, 3*EMB).
            qkv = (jnp.dot(x_ref[...], w_qkv,
                           preferred_element_type=jnp.float32) + b_qkv)

            def head_slice(block, h):                      # block: 0=q, 1=k, 2=v
                base = block * EMB + h * DK
                return qkv[:, base:base + DK]              # (m, DK) static slice
        else:
            projs = []
            for blk, ref in enumerate((q_ref, k_ref, v_ref)):
                wb = w_qkv[:, blk * EMB:(blk + 1) * EMB]
                bb = b_qkv[:, blk * EMB:(blk + 1) * EMB]
                projs.append(jnp.dot(ref[...], wb,
                                     preferred_element_type=jnp.float32) + bb)

            def head_slice(block, h):
                return projs[block][:, h * DK:(h + 1) * DK]

        probs = []
        out_acc = None
        for h in range(HEAD):                              # unrolled head loop
            qh = head_slice(0, h)                          # (m, DK), scale folded in
            kh = head_slice(1, h)
            vh = head_slice(2, h)

            # scores = q @ k^T : contract DK axes directly, stays 2D (m, m).
            s = lax.dot_general(qh, kh, (((1,), (1,)), ((), ())),
                                preferred_element_type=jnp.float32)
            # Precomputed keep/fill: kept -> s, in-block masked -> -1e9 exactly,
            # cross-batch -> -1e30 (excluded from softmax).  One mul + add.
            s = s * m_ref[h] + m_ref[HEAD + h]

            # numerically-stable softmax; reciprocal on the EUP slot.
            s = s - jnp.max(s, axis=-1, keepdims=True)
            e = jnp.exp(s)
            p = e * pl.reciprocal(jnp.sum(e, axis=-1, keepdims=True), approx=True)
            probs.append(p)
            # TODO(synk): attention-probs dropout (train mode) not implemented.

            ctx = jnp.dot(p, vh, preferred_element_type=jnp.float32)      # (m, DK)
            part = jnp.dot(ctx, w_o[h * DK:(h + 1) * DK, :],
                           preferred_element_type=jnp.float32)            # (m, EMB)
            out_acc = part if out_acc is None else out_acc + part

        out_ref[...] = out_acc + b_o                       # one lane-dense store
        attn_ref[...] = jnp.concatenate(probs, axis=1)     # one (m, HEAD*m) store

    return kernel


# ------------------------------ JAX wrapper ---------------------------------
def _full_spec(shape):
    zeros = (0,) * len(shape)
    return pl.BlockSpec(shape, lambda *_: zeros)


def _build_mask_slab(mask, bsz, seq):
    """Precompute keep/fill masks (hoisted out of the kernel head loop).

    Returns (2*HEAD, m, m): [0:HEAD] = keep (1.0 keep / 0.0 drop),
    [HEAD:] = fill (0 kept, -1e9 in-block masked, -1e30 cross-batch)."""
    m = bsz * seq
    batch_id = jnp.arange(m) // seq
    same_batch = batch_id[:, None] == batch_id[None, :]            # (m, m)
    if mask is None:
        user_keep = jnp.ones((HEAD, seq, seq), dtype=bool)
    else:
        user_keep = mask != 0                                       # (HEAD, S, S)
    keep = jnp.logical_and(same_batch[None, :, :],
                           jnp.tile(user_keep, (1, bsz, bsz)))      # (HEAD, m, m)
    keep_f = keep.astype(jnp.float32)
    fill = jnp.where(keep, 0.0,
                     jnp.where(same_batch[None, :, :], -1e9, -1e30)
                     ).astype(jnp.float32)
    return jnp.concatenate([keep_f, fill], axis=0)                  # (2*HEAD, m, m)


def multi_headed_attention(params, query, key, value, mask=None, *,
                           self_attention=True):
    """Mirrors MultiHeadedAttention.forward (eval mode; dropout = identity).

    `self_attention` must be set explicitly (static): under jit the q/k/v
    arguments are distinct tracers, so identity checks cannot be used.
    Returns (output, attn) where `attn` mirrors the module's `self.attn`.
    """
    bsz, seq, emb = query.shape
    assert emb == EMB
    assert key.shape == (bsz, seq, emb) and value.shape == (bsz, seq, emb)
    m = bsz * seq

    w_slab = params["w_slab"]
    mask_slab = _build_mask_slab(mask, bsz, seq)

    if self_attention:
        args = (query.reshape(m, emb), w_slab, mask_slab)
    else:
        args = (query.reshape(m, emb), key.reshape(m, emb),
                value.reshape(m, emb), w_slab, mask_slab)

    out2d, attn2d = pl.pallas_call(
        _make_mha_kernel(self_attention),
        out_shape=(jax.ShapeDtypeStruct((m, EMB), jnp.float32),
                   jax.ShapeDtypeStruct((m, HEAD * m), jnp.float32)),
        in_specs=[_full_spec(a.shape) for a in args],
        out_specs=(_full_spec((m, EMB)), _full_spec((m, HEAD * m))),
    )(*args)

    out = out2d.reshape(bsz, seq, emb)
    # Un-pack the block-diagonal (m, HEAD*m) probs slab -> (B, HEAD, S, S).
    attn5 = attn2d.reshape(bsz, seq, HEAD, bsz, seq)
    b_idx = jnp.arange(bsz)
    attn = attn5[b_idx, :, :, b_idx, :].transpose(0, 2, 1, 3)
    return out, attn


# ------------------------------- parameters ---------------------------------
def init_raw_params(key):
    """nn.Linear-style init, PyTorch (out, in) layout, for q/k/v/o."""
    keys = jax.random.split(key, 8)
    bound = 1.0 / math.sqrt(EMB)
    raw = {}
    for i, n in enumerate(("q", "k", "v", "o")):
        raw[f"w{n}"] = jax.random.uniform(keys[2 * i], (EMB, EMB), jnp.float32,
                                          minval=-bound, maxval=bound)
        raw[f"b{n}"] = jax.random.uniform(keys[2 * i + 1], (EMB,), jnp.float32,
                                          minval=-bound, maxval=bound)
    return raw


def pack_params(raw):
    """Pack all weights/biases into ONE slab; fold 1/sqrt(d_k) into Q."""
    w_qkv = jnp.concatenate([raw["wq"].T * SCALE, raw["wk"].T, raw["wv"].T],
                            axis=1)                                  # (EMB, 3*EMB)
    b_qkv = jnp.concatenate([raw["bq"] * SCALE, raw["bk"], raw["bv"]]
                            ).reshape(1, 3 * EMB)
    top = jnp.concatenate([w_qkv, raw["wo"].T], axis=1)              # (EMB, 4*EMB)
    bot = jnp.concatenate([b_qkv, raw["bo"].reshape(1, EMB)], axis=1)
    return {"w_slab": jnp.concatenate([top, bot], axis=0)}           # (EMB+1, 4*EMB)


# --------------------------- pure-JAX reference ------------------------------
def _reference_forward(raw, query, key, value, mask):
    """Pure-JAX mirror of the PyTorch module (eval mode) for validation."""
    b, s, e = query.shape

    def lin(x, w, bias):
        return x.reshape(-1, e) @ w.T + bias

    def split(t):
        return t.reshape(b, s, HEAD, DK).transpose(0, 2, 1, 3)       # (B, H, S, DK)

    q = split(lin(query, raw["wq"], raw["bq"]))
    k = split(lin(key, raw["wk"], raw["bk"]))
    v = split(lin(value, raw["wv"], raw["bv"]))
    scores = jnp.einsum("bhqd,bhkd->bhqk", q, k) / math.sqrt(DK)
    if mask is not None:
        scores = jnp.where(mask[None] == 0, -1e9, scores)
    p = jax.nn.softmax(scores, axis=-1)
    ctx = jnp.einsum("bhqk,bhkd->bhqd", p, v)
    ctx = ctx.transpose(0, 2, 1, 3).reshape(b * s, e)
    out = ctx @ raw["wo"].T + raw["bo"]
    return out.reshape(b, s, e), p


# --------------------------------- driver -----------------------------------
if __name__ == "__main__":
    root = jax.random.PRNGKey(0)
    k_param, k_x, k_q, k_k, k_v, k_m = jax.random.split(root, 6)

    raw = init_raw_params(k_param)
    params = pack_params(raw)

    # --- spec scenario: query = key = value = pe_result, mask = zeros(H, S, S)
    x = jax.random.normal(k_x, (BATCH, SEQ, EMB), dtype=jnp.float32)
    mask0 = jnp.zeros((HEAD, SEQ, SEQ), dtype=jnp.float32)

    out, attn = multi_headed_attention(params, x, x, x, mask0, self_attention=True)
    out = jax.block_until_ready(out)
    attn = jax.block_until_ready(attn)
    assert out.shape == (BATCH, SEQ, EMB)
    assert attn.shape == (BATCH, HEAD, SEQ, SEQ)

    ref_out, ref_attn = _reference_forward(raw, x, x, x, mask0)
    assert float(jnp.max(jnp.abs(out - ref_out))) < 1e-2
    assert float(jnp.max(jnp.abs(attn - ref_attn))) < 1e-2

    # --- cross-attention path with a partial mask (explicit static flag)
    q2 = jax.random.normal(k_q, (BATCH, SEQ, EMB), dtype=jnp.float32)
    k2 = jax.random.normal(k_k, (BATCH, SEQ, EMB), dtype=jnp.float32)
    v2 = jax.random.normal(k_v, (BATCH, SEQ, EMB), dtype=jnp.float32)
    mask1 = (jax.random.uniform(k_m, (HEAD, SEQ, SEQ)) > 0.3).astype(jnp.float32)

    out2, attn2 = multi_headed_attention(params, q2, k2, v2, mask1,
                                         self_attention=False)
    out2 = jax.block_until_ready(out2)
    ref_out2, ref_attn2 = _reference_forward(raw, q2, k2, v2, mask1)
    assert float(jnp.max(jnp.abs(out2 - ref_out2))) < 1e-2
    assert float(jnp.max(jnp.abs(attn2 - ref_attn2))) < 1e-2

    print("KERNEL_OK")
</pallas_src>

<mosaic_0001>
module attributes {stable_mosaic.version = 11 : i64} {
  func.func @kernel(%arg0: memref<8x32xf32, #tpu.memory_space<vmem>>, %arg1: memref<33x128xf32, #tpu.memory_space<vmem>>, %arg2: memref<8x8x8xf32, #tpu.memory_space<vmem>>, %arg3: memref<8x32xf32, #tpu.memory_space<vmem>>, %arg4: memref<8x32xf32, #tpu.memory_space<vmem>>) attributes {dimension_semantics = [], scalar_prefetch = 0 : i64, scratch_operands = 0 : i64, tpu.core_type = #tpu.core_type<tc>} {
    %c0 = arith.constant 0 : index
    %c0_0 = arith.constant 0 : index
    %0 = vector.load %arg1[%c0, %c0_0] : memref<33x128xf32, #tpu.memory_space<vmem>>, vector<33x128xf32>
    %1 = vector.extract_strided_slice %0 {offsets = [0, 0], sizes = [32, 96], strides = [1, 1]} : vector<33x128xf32> to vector<32x96xf32>
    %2 = vector.extract_strided_slice %0 {offsets = [0, 96], sizes = [32, 32], strides = [1, 1]} : vector<33x128xf32> to vector<32x32xf32>
    %3 = vector.extract_strided_slice %0 {offsets = [32, 0], sizes = [1, 96], strides = [1, 1]} : vector<33x128xf32> to vector<1x96xf32>
    %4 = vector.extract_strided_slice %0 {offsets = [32, 96], sizes = [1, 32], strides = [1, 1]} : vector<33x128xf32> to vector<1x32xf32>
    %c0_1 = arith.constant 0 : index
    %c0_2 = arith.constant 0 : index
    %5 = vector.load %arg0[%c0_1, %c0_2] : memref<8x32xf32, #tpu.memory_space<vmem>>, vector<8x32xf32>
    %cst = arith.constant dense<0.000000e+00> : vector<8x96xf32>
    %6 = tpu.matmul %5, %1, %cst {dimension_numbers = #tpu.dot_dimension_numbers<[1], [0], [0], [1], [0, 0, 1, 1], [], []>} : vector<8x32xf32>, vector<32x96xf32>, vector<8x96xf32> -> vector<8x96xf32>
    %7 = vector.broadcast %3 : vector<1x96xf32> to vector<8x96xf32>
    %8 = arith.addf %6, %7 : vector<8x96xf32>
    %9 = vector.extract_strided_slice %8 {offsets = [0, 0], sizes = [8, 8], strides = [1, 1]} : vector<8x96xf32> to vector<8x8xf32>
    %10 = vector.extract_strided_slice %8 {offsets = [0, 32], sizes = [8, 8], strides = [1, 1]} : vector<8x96xf32> to vector<8x8xf32>
    %11 = vector.extract_strided_slice %8 {offsets = [0, 64], sizes = [8, 8], strides = [1, 1]} : vector<8x96xf32> to vector<8x8xf32>
    %cst_3 = arith.constant dense<0.000000e+00> : vector<8x8xf32>
    %12 = tpu.matmul %9, %10, %cst_3 {dimension_numbers = #tpu.dot_dimension_numbers<[1], [1], [0], [0], [0, 0, 1, 0], [], []>} : vector<8x8xf32>, vector<8x8xf32>, vector<8x8xf32> -> vector<8x8xf32>
    %c0_4 = arith.constant 0 : index
    %c0_5 = arith.constant 0 : index
    %c0_6 = arith.constant 0 : index
    %13 = vector.load %arg2[%c0_4, %c0_5, %c0_6] : memref<8x8x8xf32, #tpu.memory_space<vmem>>, vector<1x8x8xf32>
    %14 = vector.shape_cast %13 : vector<1x8x8xf32> to vector<8x8xf32>
    %15 = arith.mulf %12, %14 : vector<8x8xf32>
    %c4 = arith.constant 4 : index
    %c0_7 = arith.constant 0 : index
    %c0_8 = arith.constant 0 : index
    %16 = vector.load %arg2[%c4, %c0_7, %c0_8] : memref<8x8x8xf32, #tpu.memory_space<vmem>>, vector<1x8x8xf32>
    %17 = vector.shape_cast %16 : vector<1x8x8xf32> to vector<8x8xf32>
    %18 = arith.addf %15, %17 : vector<8x8xf32>
    %cst_9 = arith.constant dense<0xFF800000> : vector<8xf32>
    %19 = vector.multi_reduction <maximumf>, %18, %cst_9 [1] : vector<8x8xf32> to vector<8xf32>
    %20 = vector.shape_cast %19 : vector<8xf32> to vector<8x1xf32>
    %21 = vector.broadcast %20 : vector<8x1xf32> to vector<8x8xf32>
    %22 = arith.subf %18, %21 : vector<8x8xf32>
    %23 = math.exp %22 : vector<8x8xf32>
    %cst_10 = arith.constant dense<0.000000e+00> : vector<8xf32>
    %24 = vector.multi_reduction <add>, %23, %cst_10 [1] : vector<8x8xf32> to vector<8xf32>
    %25 = vector.shape_cast %24 : vector<8xf32> to vector<8x1xf32>
    %26 = tpu.reciprocal %25 {approx = true} : vector<8x1xf32> -> vector<8x1xf32>
    %27 = vector.broadcast %26 : vector<8x1xf32> to vector<8x8xf32>
    %28 = arith.mulf %23, %27 : vector<8x8xf32>
    %cst_11 = arith.constant dense<0.000000e+00> : vector<8x8xf32>
    %29 = tpu.matmul %28, %11, %cst_11 {dimension_numbers = #tpu.dot_dimension_numbers<[1], [0], [0], [1], [0, 0, 1, 1], [], []>} : vector<8x8xf32>, vector<8x8xf32>, vector<8x8xf32> -> vector<8x8xf32>
    %30 = vector.extract_strided_slice %2 {offsets = [0, 0], sizes = [8, 32], strides = [1, 1]} : vector<32x32xf32> to vector<8x32xf32>
    %cst_12 = arith.constant dense<0.000000e+00> : vector<8x32xf32>
    %31 = tpu.matmul %29, %30, %cst_12 {dimension_numbers = #tpu.dot_dimension_numbers<[1], [0], [0], [1], [0, 0, 1, 1], [], []>} : vector<8x8xf32>, vector<8x32xf32>, vector<8x32xf32> -> vector<8x32xf32>
    %32 = vector.extract_strided_slice %8 {offsets = [0, 8], sizes = [8, 8], strides = [1, 1]} : vector<8x96xf32> to vector<8x8xf32>
    %33 = vector.extract_strided_slice %8 {offsets = [0, 40], sizes = [8, 8], strides = [1, 1]} : vector<8x96xf32> to vector<8x8xf32>
    %34 = vector.extract_strided_slice %8 {offsets = [0, 72], sizes = [8, 8], strides = [1, 1]} : vector<8x96xf32> to vector<8x8xf32>
    %cst_13 = arith.constant dense<0.000000e+00> : vector<8x8xf32>
    %35 = tpu.matmul %32, %33, %cst_13 {dimension_numbers = #tpu.dot_dimension_numbers<[1], [1], [0], [0], [0, 0, 1, 0], [], []>} : vector<8x8xf32>, vector<8x8xf32>, vector<8x8xf32> -> vector<8x8xf32>
    %c1 = arith.constant 1 : index
    %c0_14 = arith.constant 0 : index
    %c0_15 = arith.constant 0 : index
    %36 = vector.load %arg2[%c1, %c0_14, %c0_15] : memref<8x8x8xf32, #tpu.memory_space<vmem>>, vector<1x8x8xf32>
    %37 = vector.shape_cast %36 : vector<1x8x8xf32> to vector<8x8xf32>
    %38 = arith.mulf %35, %37 : vector<8x8xf32>
    %c5 = arith.constant 5 : index
    %c0_16 = arith.constant 0 : index
    %c0_17 = arith.constant 0 : index
    %39 = vector.load %arg2[%c5, %c0_16, %c0_17] : memref<8x8x8xf32, #tpu.memory_space<vmem>>, vector<1x8x8xf32>
    %40 = vector.shape_cast %39 : vector<1x8x8xf32> to vector<8x8xf32>
    %41 = arith.addf %38, %40 : vector<8x8xf32>
    %cst_18 = arith.constant dense<0xFF800000> : vector<8xf32>
    %42 = vector.multi_reduction <maximumf>, %41, %cst_18 [1] : vector<8x8xf32> to vector<8xf32>
    %43 = vector.shape_cast %42 : vector<8xf32> to vector<8x1xf32>
    %44 = vector.broadcast %43 : vector<8x1xf32> to vector<8x8xf32>
    %45 = arith.subf %41, %44 : vector<8x8xf32>
    %46 = math.exp %45 : vector<8x8xf32>
    %cst_19 = arith.constant dense<0.000000e+00> : vector<8xf32>
    %47 = vector.multi_reduction <add>, %46, %cst_19 [1] : vector<8x8xf32> to vector<8xf32>
    %48 = vector.shape_cast %47 : vector<8xf32> to vector<8x1xf32>
    %49 = tpu.reciprocal %48 {approx = true} : vector<8x1xf32> -> vector<8x1xf32>
    %50 = vector.broadcast %49 : vector<8x1xf32> to vector<8x8xf32>
    %51 = arith.mulf %46, %50 : vector<8x8xf32>
    %cst_20 = arith.constant dense<0.000000e+00> : vector<8x8xf32>
    %52 = tpu.matmul %51, %34, %cst_20 {dimension_numbers = #tpu.dot_dimension_numbers<[1], [0], [0], [1], [0, 0, 1, 1], [], []>} : vector<8x8xf32>, vector<8x8xf32>, vector<8x8xf32> -> vector<8x8xf32>
    %53 = vector.extract_strided_slice %2 {offsets = [8, 0], sizes = [8, 32], strides = [1, 1]} : vector<32x32xf32> to vector<8x32xf32>
    %cst_21 = arith.constant dense<0.000000e+00> : vector<8x32xf32>
    %54 = tpu.matmul %52, %53, %cst_21 {dimension_numbers = #tpu.dot_dimension_numbers<[1], [0], [0], [1], [0, 0, 1, 1], [], []>} : vector<8x8xf32>, vector<8x32xf32>, vector<8x32xf32> -> vector<8x32xf32>
    %55 = arith.addf %31, %54 : vector<8x32xf32>
    %56 = vector.extract_strided_slice %8 {offsets = [0, 16], sizes = [8, 8], strides = [1, 1]} : vector<8x96xf32> to vector<8x8xf32>
    %57 = vector.extract_strided_slice %8 {offsets = [0, 48], sizes = [8, 8], strides = [1, 1]} : vector<8x96xf32> to vector<8x8xf32>
    %58 = vector.extract_strided_slice %8 {offsets = [0, 80], sizes = [8, 8], strides = [1, 1]} : vector<8x96xf32> to vector<8x8xf32>
    %cst_22 = arith.constant dense<0.000000e+00> : vector<8x8xf32>
    %59 = tpu.matmul %56, %57, %cst_22 {dimension_numbers = #tpu.dot_dimension_numbers<[1], [1], [0], [0], [0, 0, 1, 0], [], []>} : vector<8x8xf32>, vector<8x8xf32>, vector<8x8xf32> -> vector<8x8xf32>
    %c2 = arith.constant 2 : index
    %c0_23 = arith.constant 0 : index
    %c0_24 = arith.constant 0 : index
    %60 = vector.load %arg2[%c2, %c0_23, %c0_24] : memref<8x8x8xf32, #tpu.memory_space<vmem>>, vector<1x8x8xf32>
    %61 = vector.shape_cast %60 : vector<1x8x8xf32> to vector<8x8xf32>
    %62 = arith.mulf %59, %61 : vector<8x8xf32>
    %c6 = arith.constant 6 : index
    %c0_25 = arith.constant 0 : index
    %c0_26 = arith.constant 0 : index
    %63 = vector.load %arg2[%c6, %c0_25, %c0_26] : memref<8x8x8xf32, #tpu.memory_space<vmem>>, vector<1x8x8xf32>
    %64 = vector.shape_cast %63 : vector<1x8x8xf32> to vector<8x8xf32>
    %65 = arith.addf %62, %64 : vector<8x8xf32>
    %cst_27 = arith.constant dense<0xFF800000> : vector<8xf32>
    %66 = vector.multi_reduction <maximumf>, %65, %cst_27 [1] : vector<8x8xf32> to vector<8xf32>
    %67 = vector.shape_cast %66 : vector<8xf32> to vector<8x1xf32>
    %68 = vector.broadcast %67 : vector<8x1xf32> to vector<8x8xf32>
    %69 = arith.subf %65, %68 : vector<8x8xf32>
    %70 = math.exp %69 : vector<8x8xf32>
    %cst_28 = arith.constant dense<0.000000e+00> : vector<8xf32>
    %71 = vector.multi_reduction <add>, %70, %cst_28 [1] : vector<8x8xf32> to vector<8xf32>
    %72 = vector.shape_cast %71 : vector<8xf32> to vector<8x1xf32>
    %73 = tpu.reciprocal %72 {approx = true} : vector<8x1xf32> -> vector<8x1xf32>
    %74 = vector.broadcast %73 : vector<8x1xf32> to vector<8x8xf32>
    %75 = arith.mulf %70, %74 : vector<8x8xf32>
    %cst_29 = arith.constant dense<0.000000e+00> : vector<8x8xf32>
    %76 = tpu.matmul %75, %58, %cst_29 {dimension_numbers = #tpu.dot_dimension_numbers<[1], [0], [0], [1], [0, 0, 1, 1], [], []>} : vector<8x8xf32>, vector<8x8xf32>, vector<8x8xf32> -> vector<8x8xf32>
    %77 = vector.extract_strided_slice %2 {offsets = [16, 0], sizes = [8, 32], strides = [1, 1]} : vector<32x32xf32> to vector<8x32xf32>
    %cst_30 = arith.constant dense<0.000000e+00> : vector<8x32xf32>
    %78 = tpu.matmul %76, %77, %cst_30 {dimension_numbers = #tpu.dot_dimension_numbers<[1], [0], [0], [1], [0, 0, 1, 1], [], []>} : vector<8x8xf32>, vector<8x32xf32>, vector<8x32xf32> -> vector<8x32xf32>
    %79 = arith.addf %55, %78 : vector<8x32xf32>
    %80 = vector.extract_strided_slice %8 {offsets = [0, 24], sizes = [8, 8], strides = [1, 1]} : vector<8x96xf32> to vector<8x8xf32>
    %81 = vector.extract_strided_slice %8 {offsets = [0, 56], sizes = [8, 8], strides = [1, 1]} : vector<8x96xf32> to vector<8x8xf32>
    %82 = vector.extract_strided_slice %8 {offsets = [0, 88], sizes = [8, 8], strides = [1, 1]} : vector<8x96xf32> to vector<8x8xf32>
    %cst_31 = arith.constant dense<0.000000e+00> : vector<8x8xf32>
    %83 = tpu.matmul %80, %81, %cst_31 {dimension_numbers = #tpu.dot_dimension_numbers<[1], [1], [0], [0], [0, 0, 1, 0], [], []>} : vector<8x8xf32>, vector<8x8xf32>, vector<8x8xf32> -> vector<8x8xf32>
    %c3 = arith.constant 3 : index
    %c0_32 = arith.constant 0 : index
    %c0_33 = arith.constant 0 : index
    %84 = vector.load %arg2[%c3, %c0_32, %c0_33] : memref<8x8x8xf32, #tpu.memory_space<vmem>>, vector<1x8x8xf32>
    %85 = vector.shape_cast %84 : vector<1x8x8xf32> to vector<8x8xf32>
    %86 = arith.mulf %83, %85 : vector<8x8xf32>
    %c7 = arith.constant 7 : index
    %c0_34 = arith.constant 0 : index
    %c0_35 = arith.constant 0 : index
    %87 = vector.load %arg2[%c7, %c0_34, %c0_35] : memref<8x8x8xf32, #tpu.memory_space<vmem>>, vector<1x8x8xf32>
    %88 = vector.shape_cast %87 : vector<1x8x8xf32> to vector<8x8xf32>
    %89 = arith.addf %86, %88 : vector<8x8xf32>
    %cst_36 = arith.constant dense<0xFF800000> : vector<8xf32>
    %90 = vector.multi_reduction <maximumf>, %89, %cst_36 [1] : vector<8x8xf32> to vector<8xf32>
    %91 = vector.shape_cast %90 : vector<8xf32> to vector<8x1xf32>
    %92 = vector.broadcast %91 : vector<8x1xf32> to vector<8x8xf32>
    %93 = arith.subf %89, %92 : vector<8x8xf32>
    %94 = math.exp %93 : vector<8x8xf32>
    %cst_37 = arith.constant dense<0.000000e+00> : vector<8xf32>
    %95 = vector.multi_reduction <add>, %94, %cst_37 [1] : vector<8x8xf32> to vector<8xf32>
    %96 = vector.shape_cast %95 : vector<8xf32> to vector<8x1xf32>
    %97 = tpu.reciprocal %96 {approx = true} : vector<8x1xf32> -> vector<8x1xf32>
    %98 = vector.broadcast %97 : vector<8x1xf32> to vector<8x8xf32>
    %99 = arith.mulf %94, %98 : vector<8x8xf32>
    %cst_38 = arith.constant dense<0.000000e+00> : vector<8x8xf32>
    %100 = tpu.matmul %99, %82, %cst_38 {dimension_numbers = #tpu.dot_dimension_numbers<[1], [0], [0], [1], [0, 0, 1, 1], [], []>} : vector<8x8xf32>, vector<8x8xf32>, vector<8x8xf32> -> vector<8x8xf32>
    %101 = vector.extract_strided_slice %2 {offsets = [24, 0], sizes = [8, 32], strides = [1, 1]} : vector<32x32xf32> to vector<8x32xf32>
    %cst_39 = arith.constant dense<0.000000e+00> : vector<8x32xf32>
    %102 = tpu.matmul %100, %101, %cst_39 {dimension_numbers = #tpu.dot_dimension_numbers<[1], [0], [0], [1], [0, 0, 1, 1], [], []>} : vector<8x8xf32>, vector<8x32xf32>, vector<8x32xf32> -> vector<8x32xf32>
    %103 = arith.addf %79, %102 : vector<8x32xf32>
    %104 = vector.broadcast %4 : vector<1x32xf32> to vector<8x32xf32>
    %105 = arith.addf %103, %104 : vector<8x32xf32>
    %c0_40 = arith.constant 0 : index
    %c0_41 = arith.constant 0 : index
    %106 = vector.load %arg3[%c0_40, %c0_41] : memref<8x32xf32, #tpu.memory_space<vmem>>, vector<8x32xf32>
    tpu.vector_store %arg3[%c0_40, %c0_41], %105 {strides = array<i32>} : memref<8x32xf32, #tpu.memory_space<vmem>>, vector<8x32xf32>,
    %107 = tpu.concatenate %28, %51, %75, %99 in 1 : vector<8x8xf32>, vector<8x8xf32>, vector<8x8xf32>, vector<8x8xf32> -> vector<8x32xf32>
    %c0_42 = arith.constant 0 : index
    %c0_43 = arith.constant 0 : index
    %108 = vector.load %arg4[%c0_42, %c0_43] : memref<8x32xf32, #tpu.memory_space<vmem>>, vector<8x32xf32>
    tpu.vector_store %arg4[%c0_42, %c0_43], %107 {strides = array<i32>} : memref<8x32xf32, #tpu.memory_space<vmem>>, vector<8x32xf32>,
    return
  }
}

</mosaic_0001>

<bundles_post_ra>
// kernel: tpu_custom_call.1
= control target key start
LH: loop header
LB: loop body
LE: loop exit
PB: predicated region body
PF: predicated region fallthrough
CT: control target
= control target key end

     0   :  { %10 = vsyncpa [#allocation3], 0  ;;  %s1696_s0 = inlined_call_operand.hbm [shape: f32[8,32], index: 0, kind: input, shape index: {}]   ;;  %s1697_s1 = inlined_call_operand.hbm [shape: f32[33,128], index: 1, kind: input, shape index: {}]   ;;  %s1698_s2 = inlined_call_operand.hbm [shape: f32[8,8,8], index: 2, kind: input, shape index: {}]   ;;  %s1699_s3 = inlined_call_operand.hbm [shape: f32[8,32], index: 3, kind: output, shape index: {0}]   ;;  %s1700_s4 = inlined_call_operand.hbm [shape: f32[8,32], index: 4, kind: output, shape index: {1}]  }
   0x1   :  { %11 = vsyncpa [#allocation6], 0 }
   0x2   :  { %12 = vsyncpa [#allocation4], 0 }
   0x3   :  { %13 = vsyncpa [#allocation10], 0  ;;  %s1467_s15 = smov [#allocation5]   ;;  %s1349_s19 = scalar_lea.hbm %s1697_s1, 640 }
   0x4   :  { %s29_s16 = sshll.u32 %s1467_s15, 4  ;;  %p1350_p0 = scmp.ne.s32.totalorder %s1697_s1, %s1349_s19  ;;  %s30_s16 = int_to_ptr.vmem [resolvable:$true] %s29_s16 }
   0x5   :  { %p1353_p1 = scmp.lt.u32.totalorder %s1349_s19, %s1697_s1 }
   0x7   :  { %p1355_p2 = pnand %p1353_p1, %p1350_p0 }
   0x9   :  { %1358 = shalt.err (!%p1355_p2)
}
   0xa   :  { %s1359_s24 = scalar_lea.vmem %s30_s16, 640  ;;  %p1364_p4 = scmp.lt.s32.totalorder %s30_s16, %s30_s16 }
   0xb   :  { %p1360_p3 = scmp.ne.s32.totalorder %s30_s16, %s1359_s24  ;;  %p1365_p5 = scmp.lt.s32.totalorder %s1359_s24, %s1359_s24 }
   0xd   :  { %p1366_p6 = por %p1365_p5, %p1364_p4 }
   0xf   :  { %p1367_p7 = pnand %p1366_p6, %p1360_p3 }
  0x11   :  { %1370 = shalt.err (!%p1367_p7)
}
  0x12   :  { %s1468_s25 = smov 128   ;;  %s1469_s26 = smov 8  }
  0x13   :  { %35 = dma.hbm_to_vmem [thread:$0]  %s1697_s1, 640, %s30_s16, [#allocation6], %s1468_s25, %s1468_s25, %s1469_s26  }
  0x14   :  { %s1470_s29 = smov [#allocation2]   ;;  %s1471_s5 = smov [#allocation7]  }
  0x15   :  { %s20_s30 = sshll.u32 %s1470_s29, 4  ;;  %s41_s6 = sshll.u32 %s1471_s5, 4  ;;  %s21_s30 = int_to_ptr.vmem [resolvable:$true] %s20_s30  ;;  %s42_s6 = int_to_ptr.vmem [resolvable:$true] %s41_s6 }
  0x16   :  { %s1371_s9 = scalar_lea.hbm %s1696_s0, 128 }
  0x17   :  { %p1372_p8 = scmp.ne.s32.totalorder %s1696_s0, %s1371_s9  ;;  %p1375_p9 = scmp.lt.u32.totalorder %s1371_s9, %s1696_s0 }
  0x19   :  { %p1377_p10 = pnand %p1375_p9, %p1372_p8 }
  0x1b   :  { %1380 = shalt.err (!%p1377_p10)
}
  0x1c   :  { %s1381_s1 = scalar_lea.vmem %s21_s30, 128  ;;  %p1386_p12 = scmp.lt.s32.totalorder %s21_s30, %s21_s30 }
  0x1d   :  { %p1382_p11 = scmp.ne.s32.totalorder %s21_s30, %s1381_s1  ;;  %p1387_p13 = scmp.lt.s32.totalorder %s1381_s1, %s1381_s1 }
  0x1f   :  { %p1388_p0 = por %p1387_p13, %p1386_p12 }
  0x21   :  { %p1389_p1 = pnand %p1388_p0, %p1382_p11 }
  0x23   :  { %1392 = shalt.err (!%p1389_p1)
}
  0x24   :  { %23 = dma.hbm_to_vmem [thread:$0]  %s1696_s0, 128, %s21_s30, [#allocation3]  }
  0x25   :  { %s1393_s18 = scalar_lea.hbm %s1698_s2, 1024 }
  0x26   :  { %p1394_p2 = scmp.ne.s32.totalorder %s1698_s2, %s1393_s18  ;;  %p1397_p3 = scmp.lt.u32.totalorder %s1393_s18, %s1698_s2 }
  0x28   :  { %p1399_p4 = pnand %p1397_p3, %p1394_p2 }
  0x2a   :  { %1402 = shalt.err (!%p1399_p4)
}
  0x2b   :  { %s1403_s23 = scalar_lea.vmem %s42_s6, 1024  ;;  %p1408_p6 = scmp.lt.s32.totalorder %s42_s6, %s42_s6 }
  0x2c   :  { %p1404_p5 = scmp.ne.s32.totalorder %s42_s6, %s1403_s23  ;;  %p1409_p7 = scmp.lt.s32.totalorder %s1403_s23, %s1403_s23 }
  0x2e   :  { %p1410_p8 = por %p1409_p7, %p1408_p6 }
  0x30   :  { %p1411_p9 = pnand %p1410_p8, %p1404_p5 }
  0x32   :  { %1414 = shalt.err (!%p1411_p9)
}
  0x33   :  { %47 = dma.hbm_to_vmem [thread:$0]  %s1698_s2, 1024, %s42_s6, [#allocation6], %s1468_s25, %s1468_s25, %s1469_s26  }
  0x34   :  { %1459 = dma.done.wait [#allocation3], 128  }
  0x35   :  { %1460 = vsyncadd [#allocation3], 4294967168 }
  0x36   :  { %1461 = dma.done.wait [#allocation6], 1664  }
  0x37   :  { %1462 = vsyncadd [#allocation6], 4294965632  ;;  %v1472_v0 = vmov 0.0|0.0   ;;  %vm1473_vm0 = vmmov 0   ;;  %v1474_v1 = vmov 0.0   ;;  %v1563_v2 = vld [vmem:[#allocation5] sm:$0xff] }
  0x38   :  { %1303 = vmatprep.subr.bf16.mxu0 %v1472_v0  ;;  %1240 = vmatprep.mubr.msk.f32.mxu0 %vm1473_vm0, %v1474_v1  ;;  %v1565_v3 = vld [vmem:[#allocation5 + $0x8] sm:$0xff]  ;;  %v1567_v4 = vld [vmem:[#allocation5 + $0x10] sm:$0xff]  ;;  %v1571_v6 = vld [vmem:[#allocation5 + $0x18] sm:$0xff]  ;;  %vm67_vm1 = vcmask 261120   ;;  %s1475_s2 = smov 120   ;;  %s1476_s25 = smov 96  }
  0x39   :  { %1243 = vmatprep.subr.mxu1 %v1474_v1  ;;  %1245 = vmatprep.mubr.msk.f32.mxu1 %vm1473_vm0, %v1474_v1  ;;  %v1304_v5 = vpack.c.bf16 %v1565_v3, %v1563_v2  ;;  %v1307_v7 = vpack.c.bf16 %v1571_v6, %v1567_v4  ;;  %v62_v8 = vld [vmem:[#allocation2] sm:$0xff]  ;;  %v1579_v9 = vld [vmem:[#allocation5 + $0x20] ss:$0 sm:$0xff]  ;;  %s1477_s27 = smov 88   ;;  %vm144_vm2 = vcmask 64512   ;;  %v219_v16 = vld [vmem:[#allocation7] sm:$0xff] }
  0x3a   :  { %v222_v18 = vld [vmem:[#allocation7 + $0x20] sm:$0xff]  ;;  %v390_v21 = vld [vmem:[#allocation7 + $0x8] sm:$0xff]  ;;  %s1478_s28 = smov 56   ;;  %s1479_s29 = smov 64   ;;  %v715_v57 = vld [vmem:[#allocation7 + $0x10] sm:$0xff]  ;;  %vm1150_vm3 = vcmask 130048  }
  0x3b   :  { %1305 = vmatpush3.bf16.msra.mxu0 %v1304_v5  ;;  %v393_v24 = vld [vmem:[#allocation7 + $0x28] sm:$0xff]  ;;  %s1480_s30 = smov 32   ;;  %s1481_s5 = smov 80   ;;  %v718_v59 = vld [vmem:[#allocation7 + $0x30] sm:$0xff]  ;;  %vm1152_vm4 = vcmask 195584  }
  0x3c   :  { %1306 = vmatprep.subr.bf16.mxu0 %v1472_v0  ;;  %s1482_s6 = smov 112   ;;  %s1483_s7 = smov 48  }
  0x3d   :  { %s1484_s8 = smov 72   ;;  %s1485_s9 = smov 104  }
  0x3e   :  { %s1486_s10 = smov 40   ;;  %s1487_s11 = smov 16  }
  0x3f   :  { %1308 = vmatpush3.bf16.msra.mxu0 %v1307_v7  ;;  %s1488_s12 = smov 24  }
  0x40   :  { %1253 = vmatprep.subr.mxu0 %v1474_v1 }
  0x42   :  { %1241 = vmatmul.mubr.msk.f32.vlgmr.msra.gmra.mrb[0].mxu0 %vm67_vm1, %v62_v8 }
  0x43   :  { %1255 = vmatprep.mubr.msk.f32.mxu0 %vm1473_vm0, %v1474_v1 }
 0x115   :  { %v137_v10 = vpop.f32.mrb[0].mxu0 }
 0x116   :  { %v1582_v11 = vadd.f32 %v1579_v9, %v137_v10  ;;  %v1242_v12 = vpop.f32.mrb[1].mxu0 }
 0x118   :  { %311 = vrot.lane.b32.xlu1 %v1582_v11, %s1475_s2  ;;  %142 = vrot.lane.b32.xlu0 %v1582_v11, %s1476_s25 }
 0x11c   :  { %313 = vrot.lane.b32.xlu0 %v1582_v11, %s1477_s27 }
 0x18a   :  { %v143_v13 = vpop.permute.xlu0 %142  ;;  %v312_v15 = vpop.permute.xlu1 %311 }
 0x18b   :  { %1244 = vmatpush3.xpose.msk.msra.mxu1 %vm144_vm2, %v143_v13 }
 0x18c   :  { %1248 = vmatprep.subr.mxu1 %v1474_v1 }
 0x18e   :  { %1246 = vmatmul.mubr.msk.f32.vlgmr.msra.gmra.mrb[0].mxu1 %vm144_vm2, %v1582_v11  ;;  %v314_v14 = vpop.permute.xlu0 %313 }
 0x18f   :  { %1254 = vmatpush3.xpose.msk.msra.mxu0 %vm144_vm2, %v314_v14  ;;  %1250 = vmatprep.mubr.msk.f32.mxu1 %vm1473_vm0, %v1474_v1 }
 0x190   :  { %1263 = vmatprep.subr.mxu0 %v1474_v1 }
 0x192   :  { %1256 = vmatmul.mubr.msk.f32.vlgmr.msra.gmra.mrb[2].mxu0 %vm144_vm2, %v312_v15 }
 0x193   :  { %1265 = vmatprep.mubr.msk.f32.mxu0 %vm1473_vm0, %v1474_v1 }
 0x261   :  { %v215_v17 = vpop.f32.mrb[0].mxu1 }
 0x262   :  { %v220_v19 = vmul.f32 %v219_v16, %v215_v17  ;;  %v1247_v20 = vpop.f32.mrb[1].mxu1 }
 0x264   :  { %v223_v22 = vadd.f32 %v222_v18, %v220_v19 }
 0x265   :  { %v385_v23 = vpop.f32.mrb[2].mxu0 }
 0x266   :  { %v391_v25 = vmul.f32 %v390_v21, %v385_v23  ;;  %v1257_v26 = vpop.f32.mrb[3].mxu0  ;;  %v224_v27 = vsel %vm144_vm2, %v223_v22, -inf }
 0x267   :  { %225 = vmax.xlane.f32.xlu1 %v224_v27 }
 0x268   :  { %v394_v28 = vadd.f32 %v393_v24, %v391_v25  ;;  %v967_v24 = vld [vmem:[#allocation7 + $0x38] sm:$0xff] }
 0x26a   :  { %v395_v29 = vsel %vm144_vm2, %v394_v28, -inf }
 0x26b   :  { %396 = vmax.xlane.f32.xlu0 %v395_v29 }
 0x2f4   :  { %v226_v30 = vpop.xlane.xlu1 %225 }
 0x2f5   :  { %v227_v31 = vsub.f32 %v223_v22, %v226_v30  ;;  %v964_v22 = vld [vmem:[#allocation7 + $0x18] sm:$0xff] }
 0x2f7   :  { %v228_v32 = vmul.f32 1.442695, %v227_v31 }
 0x2f8   :  { %v397_v33 = vpop.xlane.xlu0 %396 }
 0x2f9   :  { %1333 = vpow2.f32 %v228_v32  ;;  %v398_v34 = vsub.f32 %v394_v28, %v397_v33 }
 0x2fb   :  { %v399_v35 = vmul.f32 1.442695, %v398_v34 }
 0x2fd   :  { %1335 = vpow2.f32 %v399_v35 }
 0x303   :  { %v1334_v36 = vpop.eup %1333 }
 0x304   :  { %v230_v37 = vsel %vm144_vm2, %v1334_v36, 0.0 }
 0x305   :  { %231 = vadd.xlane.f32.xlu0 %v230_v37 }
 0x307   :  { %v1336_v38 = vpop.eup %1335 }
 0x308   :  { %v401_v39 = vsel %vm144_vm2, %v1336_v38, 0.0 }
 0x309   :  { %402 = vadd.xlane.f32.xlu1 %v401_v39 }
 0x31a   :  { %406 = vrot.lane.b32.xlu1 %v1582_v11, %s1478_s28 }
 0x31b   :  { %235 = vrot.lane.b32.xlu0 %v1582_v11, %s1479_s29 }
 0x31e   :  { %483 = vrot.lane.b32.xlu1 %v1565_v3, %s1480_s30 }
 0x31f   :  { %638 = vrot.lane.b32.xlu0 %v1582_v11, %s1481_s5 }
 0x322   :  { %636 = vrot.lane.b32.xlu1 %v1582_v11, %s1482_s6 }
 0x326   :  { %731 = vrot.lane.b32.xlu1 %v1582_v11, %s1483_s7 }
 0x392   :  { %v232_v40 = vpop.xlane.xlu0 %231 }
 0x393   :  { %1337 = vrcp.f32 %v232_v40 }
 0x396   :  { %v403_v41 = vpop.xlane.xlu1 %402  ;;  %v236_v42 = vpop.permute.xlu0 %235 }
 0x397   :  { %1339 = vrcp.f32 %v403_v41  ;;  %1249 = vmatpush3.msra.mxu1 %v236_v42 }
 0x398   :  { %1258 = vmatprep.subr.mxu1 %v1474_v1 }
 0x39a   :  { %v407_v43 = vpop.permute.xlu1 %406  ;;  %v639_v52 = vpop.permute.xlu0 %638 }
 0x39d   :  { %v1338_v44 = vpop.eup %1337 }
 0x39e   :  { %v1610_v45 = vmul.f32 %v1338_v44, %v1334_v36  ;;  %v484_v46 = vpop.permute.xlu1 %483 }
 0x39f   :  { %1264 = vmatpush3.msra.mxu0 %v484_v46 }
 0x3a0   :  { %1251 = vmatmul.mubr.msk.f32.vlgmr.msra.gmra.mrb[2].mxu1 %vm144_vm2, %v1610_v45  ;;  %1273 = vmatprep.subr.mxu0 %v1474_v1 }
 0x3a1   :  { %v1340_v47 = vpop.eup %1339  ;;  %1259 = vmatpush3.msra.mxu1 %v407_v43  ;;  %1260 = vmatprep.mubr.msk.f32.mxu1 %vm1473_vm0, %v1474_v1 }
 0x3a2   :  { %v1617_v48 = vmul.f32 %v1340_v47, %v1336_v38  ;;  %1268 = vmatprep.subr.mxu1 %v1474_v1  ;;  %v637_v54 = vpop.permute.xlu1 %636 }
 0x3a4   :  { %1261 = vmatmul.mubr.msk.f32.vlgmr.msra.gmra.mrb[4].mxu1 %vm144_vm2, %v1617_v48 }
 0x3a5   :  { %1270 = vmatprep.mubr.msk.f32.mxu1 %vm1473_vm0, %v1474_v1 }
 0x3a6   :  { %v732_v8 = vpop.permute.xlu1 %731 }
 0x473   :  { %v307_v49 = vpop.f32.mrb[2].mxu1 }
 0x474   :  { %v1252_v50 = vpop.f32.mrb[3].mxu1 }
 0x477   :  { %v478_v51 = vpop.f32.mrb[4].mxu1 }
 0x478   :  { %v1262_v53 = vpop.f32.mrb[5].mxu1  ;;  %1266 = vmatmul.mubr.msk.f32.vlgmr.msra.gmra.mrb[4].mxu0 %vm144_vm2, %v478_v51 }
 0x479   :  { %1274 = vmatpush3.xpose.msk.msra.mxu0 %vm144_vm2, %v639_v52  ;;  %1275 = vmatprep.mubr.msk.f32.mxu0 %vm1473_vm0, %v1474_v1 }
 0x47a   :  { %1283 = vmatprep.subr.mxu0 %v1474_v1 }
 0x47c   :  { %1276 = vmatmul.mubr.msk.f32.vlgmr.msra.gmra.mrb[6].mxu0 %vm144_vm2, %v637_v54 }
 0x47d   :  { %1285 = vmatprep.mubr.msk.f32.mxu0 %vm1473_vm0, %v1474_v1 }
 0x54b   :  { %v555_v55 = vpop.f32.mrb[4].mxu0 }
 0x54c   :  { %v1267_v56 = vpop.f32.mrb[5].mxu0 }
 0x54f   :  { %v710_v58 = vpop.f32.mrb[6].mxu0 }
 0x550   :  { %v716_v60 = vmul.f32 %v715_v57, %v710_v58  ;;  %v1277_v61 = vpop.f32.mrb[7].mxu0 }
 0x552   :  { %v719_v62 = vadd.f32 %v718_v59, %v716_v60 }
 0x554   :  { %v720_v63 = vsel %vm144_vm2, %v719_v62, -inf }
 0x555   :  { %721 = vmax.xlane.f32.xlu0 %v720_v63 }
 0x56b   :  { %560 = vrot.lane.b32.xlu0 %v1563_v2, %s1480_s30 }
 0x56f   :  { %887 = vrot.lane.b32.xlu0 %v1582_v11, %s1484_s8 }
 0x5e2   :  { %v722_v0 = vpop.xlane.xlu0 %721 }
 0x5e3   :  { %v723_v3 = vsub.f32 %v719_v62, %v722_v0 }
 0x5e5   :  { %v724_v5 = vmul.f32 1.442695, %v723_v3 }
 0x5e6   :  { %v561_v7 = vpop.permute.xlu0 %560 }
 0x5e7   :  { %1341 = vpow2.f32 %v724_v5  ;;  %1269 = vmatpush3.msra.mxu1 %v561_v7 }
 0x5e8   :  { %1271 = vmatmul.mubr.msk.f32.vlgmr.msra.gmra.mrb[6].mxu1 %vm144_vm2, %v307_v49  ;;  %1278 = vmatprep.subr.mxu1 %v1474_v1 }
 0x5e9   :  { %1279 = vmatpush3.msra.mxu1 %v732_v8  ;;  %1280 = vmatprep.mubr.msk.f32.mxu1 %vm1473_vm0, %v1474_v1 }
 0x5ea   :  { %1288 = vmatprep.subr.mxu1 %v1474_v1  ;;  %v888_v15 = vpop.permute.xlu0 %887 }
 0x5f1   :  { %v1342_v2 = vpop.eup %1341 }
 0x5f2   :  { %v726_v10 = vsel %vm144_vm2, %v1342_v2, 0.0 }
 0x5f3   :  { %727 = vadd.xlane.f32.xlu1 %v726_v10 }
 0x604   :  { %885 = vrot.lane.b32.xlu1 %v1582_v11, %s1485_s9 }
 0x680   :  { %v728_v12 = vpop.xlane.xlu1 %727 }
 0x681   :  { %1343 = vrcp.f32 %v728_v12 }
 0x684   :  { %v886_v16 = vpop.permute.xlu1 %885 }
 0x68b   :  { %v1344_v13 = vpop.eup %1343 }
 0x68c   :  { %v730_v14 = vmul.f32 %v1344_v13, %v1342_v2 }
 0x68e   :  { %1281 = vmatmul.mubr.msk.f32.vlgmr.msra.gmra.mrb[8].mxu1 %vm144_vm2, %v730_v14 }
 0x68f   :  { %1289 = vmatpush3.xpose.msk.msra.mxu1 %vm144_vm2, %v888_v15  ;;  %1290 = vmatprep.mubr.msk.f32.mxu1 %vm1473_vm0, %v1474_v1 }
 0x690   :  { %1298 = vmatprep.subr.mxu1 %v1474_v1 }
 0x692   :  { %1291 = vmatmul.mubr.msk.f32.vlgmr.msra.gmra.mrb[10].mxu1 %vm144_vm2, %v886_v16 }
 0x693   :  { %1300 = vmatprep.mubr.msk.f32.mxu1 %vm1473_vm0, %v1474_v1 }
 0x6bb   :  { %v632_v17 = vpop.f32.mrb[6].mxu1 }
 0x6bc   :  { %v633_v18 = vadd.f32 %v632_v17, %v555_v55  ;;  %v1272_v19 = vpop.f32.mrb[7].mxu1 }
 0x761   :  { %v803_v20 = vpop.f32.mrb[8].mxu1 }
 0x762   :  { %v1282_v21 = vpop.f32.mrb[9].mxu1 }
 0x765   :  { %v959_v23 = vpop.f32.mrb[10].mxu1 }
 0x766   :  { %v965_v25 = vmul.f32 %v964_v22, %v959_v23  ;;  %v1292_v26 = vpop.f32.mrb[11].mxu1 }
 0x768   :  { %v968_v27 = vadd.f32 %v967_v24, %v965_v25 }
 0x76a   :  { %v969_v28 = vsel %vm144_vm2, %v968_v27, -inf }
 0x76b   :  { %970 = vmax.xlane.f32.xlu0 %v969_v28 }
 0x781   :  { %808 = vrot.lane.b32.xlu0 %v1567_v4, %s1480_s30 }
 0x785   :  { %1057 = vrot.lane.b32.xlu0 %v1571_v6, %s1480_s30 }
 0x789   :  { %1135 = vrot.lane.b32.xlu0 %v1579_v9, %s1480_s30 }
 0x7f8   :  { %v971_v29 = vpop.xlane.xlu0 %970 }
 0x7f9   :  { %v972_v30 = vsub.f32 %v968_v27, %v971_v29 }
 0x7fb   :  { %v973_v31 = vmul.f32 1.442695, %v972_v30 }
 0x7fc   :  { %v809_v32 = vpop.permute.xlu0 %808 }
 0x7fd   :  { %1345 = vpow2.f32 %v973_v31  ;;  %1284 = vmatpush3.msra.mxu0 %v809_v32 }
 0x7fe   :  { %1286 = vmatmul.mubr.msk.f32.vlgmr.msra.gmra.mrb[8].mxu0 %vm144_vm2, %v803_v20  ;;  %1293 = vmatprep.subr.mxu0 %v1474_v1 }
 0x7ff   :  { %1295 = vmatprep.mubr.msk.f32.mxu0 %vm1473_vm0, %v1474_v1 }
 0x800   :  { %v1058_v6 = vpop.permute.xlu0 %1057 }
 0x801   :  { %1299 = vmatpush3.msra.mxu1 %v1058_v6 }
 0x804   :  { %v1136_v39 = vpop.permute.xlu0 %1135 }
 0x807   :  { %v1346_v4 = vpop.eup %1345 }
 0x808   :  { %v975_v33 = vsel %vm144_vm2, %v1346_v4, 0.0 }
 0x809   :  { %976 = vadd.xlane.f32.xlu1 %v975_v33 }
 0x81a   :  { %980 = vrot.lane.b32.xlu1 %v1582_v11, %s1486_s10 }
 0x81e   :  { %1140 = vrot.lane.b32.xlu1 %v1617_v48, %s1469_s26  ;;  %s1489_s26 = smov [#allocation9]  }
 0x81f   :  { %s1171_s13 = sshll.u32 %s1489_s26, 4  ;;  %s1172_s13 = int_to_ptr.vmem [resolvable:$true] %s1171_s13 }
 0x820   :  { %s1415_s1 = scalar_lea.vmem %s1172_s13, 128  ;;  %p1420_p11 = scmp.lt.s32.totalorder %s1172_s13, %s1172_s13 }
 0x821   :  { %p1416_p10 = scmp.ne.s32.totalorder %s1172_s13, %s1415_s1  ;;  %p1421_p12 = scmp.lt.s32.totalorder %s1415_s1, %s1415_s1 }
 0x822   :  { %1143 = vrot.lane.b32.xlu1 %v730_v14, %s1487_s11 }
 0x823   :  { %p1422_p13 = por %p1421_p12, %p1420_p11 }
 0x825   :  { %p1423_p0 = pnand %p1422_p13, %p1416_p10 }
 0x896   :  { %v977_v9 = vpop.xlane.xlu1 %976 }
 0x897   :  { %1347 = vrcp.f32 %v977_v9 }
 0x89a   :  { %v981_v34 = vpop.permute.xlu1 %980 }
 0x89b   :  { %1294 = vmatpush3.msra.mxu0 %v981_v34 }
 0x89e   :  { %v1141_v38 = vpop.permute.xlu1 %1140 }
 0x89f   :  { %v1149_v41 = vsel %vm144_vm2, %v1610_v45, %v1141_v38 }
 0x8a1   :  { %v1348_v35 = vpop.eup %1347 }
 0x8a2   :  { %v979_v1 = vmul.f32 %v1348_v35, %v1346_v4  ;;  %v1144_v40 = vpop.permute.xlu1 %1143 }
 0x8a3   :  { %v1151_v42 = vsel %vm1150_vm3, %v1149_v41, %v1144_v40 }
 0x8a4   :  { %1146 = vrot.lane.b32.xlu0 %v979_v1, %s1488_s12  ;;  %1296 = vmatmul.mubr.msk.f32.vlgmr.msra.gmra.mrb[10].mxu0 %vm144_vm2, %v979_v1 }
 0x8d1   :  { %v880_v36 = vpop.f32.mrb[8].mxu0 }
 0x8d2   :  { %v884_v37 = vadd.f32 %v880_v36, %v633_v18  ;;  %v1287_v11 = vpop.f32.mrb[9].mxu0 }
 0x916   :  { %v1147_v43 = vpop.permute.xlu0 %1146 }
 0x917   :  { %v1153_v44 = vsel %vm1152_vm4, %v1151_v42, %v1147_v43 }
 0x918   :  { %1154 = vst.msk [vmem:[#allocation9] sm:$0xff] %vm67_vm1, %v1153_v44 }
 0x977   :  { %v1052_v46 = vpop.f32.mrb[10].mxu0 }
 0x978   :  { %v1297_v47 = vpop.f32.mrb[11].mxu0  ;;  %1301 = vmatmul.mubr.msk.f32.vlgmr.msra.gmra.mrb[12].mxu1 %vm144_vm2, %v1052_v46 }
 0x979   :  { %1426 = shalt.err (!%p1423_p0)
}
 0x97a   :  { %s1427_s16 = scalar_lea.hbm %s1700_s4, 128 }
 0x97b   :  { %p1428_p1 = scmp.ne.s32.totalorder %s1700_s4, %s1427_s16  ;;  %p1431_p2 = scmp.lt.u32.totalorder %s1427_s16, %s1700_s4 }
 0x97d   :  { %p1433_p3 = pnand %p1431_p2, %p1428_p1 }
 0x97f   :  { %1436 = shalt.err (!%p1433_p3)
}
 0x980   :  { %1174 = dma.vmem_to_hbm [thread:$0]  %s1172_s13, 128, %s1700_s4, [#allocation10]  }
 0x981   :  { %s1490_s23 = smov [#allocation8]  }
 0x982   :  { %s1161_s0 = sshll.u32 %s1490_s23, 4  ;;  %s1162_s0 = int_to_ptr.vmem [resolvable:$true] %s1161_s0 }
 0x983   :  { %s1437_s24 = scalar_lea.vmem %s1162_s0, 128  ;;  %p1442_p5 = scmp.lt.s32.totalorder %s1162_s0, %s1162_s0 }
 0x984   :  { %p1438_p4 = scmp.ne.s32.totalorder %s1162_s0, %s1437_s24  ;;  %p1443_p6 = scmp.lt.s32.totalorder %s1437_s24, %s1437_s24 }
 0x986   :  { %p1444_p7 = por %p1443_p6, %p1442_p5 }
 0x988   :  { %p1445_p8 = pnand %p1444_p7, %p1438_p4 }
 0xa4b   :  { %v1129_v45 = vpop.f32.mrb[12].mxu1 }
 0xa4c   :  { %v1133_v48 = vadd.f32 %v1129_v45, %v884_v37  ;;  %v1302_v49 = vpop.f32.mrb[13].mxu1 }
 0xa4e   :  { %v1138_v50 = vadd.f32 %v1136_v39, %v1133_v48 }
 0xa50   :  { %1139 = vst.msk [vmem:[#allocation8] sm:$0xff] %vm67_vm1, %v1138_v50 }
 0xa51   :  { %1448 = shalt.err (!%p1445_p8)
}
 0xa52   :  { %s1449_s4 = scalar_lea.hbm %s1699_s3, 128 }
 0xa53   :  { %p1450_p9 = scmp.ne.s32.totalorder %s1699_s3, %s1449_s4  ;;  %p1453_p10 = scmp.lt.u32.totalorder %s1449_s4, %s1699_s3 }
 0xa55   :  { %p1455_p11 = pnand %p1453_p10, %p1450_p9 }
 0xa57   :  { %1458 = shalt.err (!%p1455_p11)
}
 0xa58   :  { %1164 = dma.vmem_to_hbm [thread:$0]  %s1162_s0, 128, %s1699_s3, [#allocation4]  }
 0xa59   :  { %1463 = dma.done.wait [#allocation4], 128  }
 0xa5a   :  { %1464 = vsyncadd [#allocation4], 4294967168 }
 0xa5b   :  { %1465 = dma.done.wait [#allocation10], 128  }
 0xa5c   :  { %1466 = vsyncadd [#allocation10], 4294967168 }
 0xa5d   :  { %1181 = vsyncpa [#allocation3], 1 }
 0xa5e   :  { %1182 = vsyncpa [#allocation6], 1 }
 0xa5f   :  { %1183 = vsyncpa [#allocation4], 1 }
 0xa60   :  { %1184 = vsyncpa [#allocation10], 1 }

</bundles_post_ra>
